<compile_context>
chip_gen: v5e
topology: v5e:2x2
jax: 0.10.0
libtpu: 0.0.40
codegen_flags: <defaults>
</compile_context>

<pallas_src>
import jax
import jax.numpy as jnp
from jax.experimental import pallas as pl
from jax.experimental.pallas import tpu as pltpu


def _round_up(x, m):
    return ((x + m - 1) // m) * m


def _device_kind():
    try:
        return jax.devices()[0].device_kind.lower()
    except Exception:
        return ""


def _vmem_limit_bytes():
    kind = _device_kind()
    if "v7" in kind:
        # v7x: 64 MiB physical per TensorCore -> leave headroom for pipeline buffers.
        return 48 * 1024 * 1024
    # v5e / v6e: 128 MiB physical; 64 MiB scoped is plenty and always safe.
    return 64 * 1024 * 1024


def _tensorcores_per_chip():
    return 2 if "v7" in _device_kind() else 1


# ----------------------------------------------------------------------------
# Kernel
# ----------------------------------------------------------------------------
def mlp_kernel(x_ref, w1_ref, b1_ref, w2_ref, b2_ref, w3_ref, b3_ref, o_ref):
    # x arrives in the caller dtype (f32); cast to bf16 in-kernel (VPU filler
    # under MXU slack) so the wrapper does no extra HBM pass over x.
    x = x_ref[...].astype(jnp.bfloat16)                               # (bm, in)
    # layer1 + ReLU  (bf16 x bf16 -> f32 accumulate on the MXU)
    h = jnp.dot(x, w1_ref[...], preferred_element_type=jnp.float32) + b1_ref[...]
    h = jnp.maximum(h, 0.0).astype(jnp.bfloat16)
    # layer2 + ReLU  (256x256 — saturates the MXU)
    h = jnp.dot(h, w2_ref[...], preferred_element_type=jnp.float32) + b2_ref[...]
    h = jnp.maximum(h, 0.0).astype(jnp.bfloat16)
    # layer3 (no activation)
    out = jnp.dot(h, w3_ref[...], preferred_element_type=jnp.float32) + b3_ref[...]
    o_ref[...] = out.astype(o_ref.dtype)


def _build_call(B, bm, in_dim, hidden, out_dim, out_dtype):
    grid = (pl.cdiv(B, bm),)
    const = lambda shape: pl.BlockSpec(shape, lambda i: (0, 0))  # grid-invariant
    return pl.pallas_call(
        mlp_kernel,
        out_shape=jax.ShapeDtypeStruct((B, out_dim), out_dtype),
        grid_spec=pltpu.PrefetchScalarGridSpec(
            num_scalar_prefetch=0,
            grid=grid,
            in_specs=[
                pl.BlockSpec((bm, in_dim), lambda i: (i, 0)),   # x row tile (f32)
                const((in_dim, hidden)),                        # W1^T (bf16, resident)
                const((1, hidden)),                             # b1 (f32)
                const((hidden, hidden)),                        # W2^T
                const((1, hidden)),                             # b2
                const((hidden, out_dim)),                       # W3^T
                const((1, out_dim)),                            # b3
            ],
            out_specs=pl.BlockSpec((bm, out_dim), lambda i: (i, 0)),
        ),
        compiler_params=pltpu.CompilerParams(
            # Row tiles are independent -> shard grid across TensorCores (v7x).
            dimension_semantics=("parallel",),
            vmem_limit_bytes=_vmem_limit_bytes(),
        ),
    )


# ----------------------------------------------------------------------------
# One-time parameter preparation (hoisted out of the hot path)
# ----------------------------------------------------------------------------
def prepare_mlp_params(w1, b1, w2, b2, w3, b3):
    """w_i in PyTorch layout (out_i, in_i); b_i: (out_i,).  Do this once."""
    return (
        w1.T.astype(jnp.bfloat16), b1.reshape(1, -1).astype(jnp.float32),
        w2.T.astype(jnp.bfloat16), b2.reshape(1, -1).astype(jnp.float32),
        w3.T.astype(jnp.bfloat16), b3.reshape(1, -1).astype(jnp.float32),
    )


def _choose_bm(B, block_m):
    # MXU-aligned row tile, capped by the (rounded-up) batch size.
    bm = min(block_m, _round_up(B, 8))
    n_tc = _tensorcores_per_chip()
    if n_tc > 1:
        # v7x only: want >= ~4 steps per TensorCore so the "parallel" axis
        # load-balances across both cores.  Never shrink below 256 rows.
        target_steps = 4 * n_tc
        while bm > 256 and pl.cdiv(B, bm) < target_steps:
            bm = max(256, _round_up(bm // 2, 8))
    return bm


def mlp_forward(x, params, *, block_m=2048):
    """x: (B, in_dim) f32; params: output of prepare_mlp_params()."""
    w1t, b1r, w2t, b2r, w3t, b3r = params
    B, in_dim = x.shape
    hidden = w1t.shape[1]
    out_dim = w3t.shape[1]

    bm = _choose_bm(B, block_m)
    call = _build_call(B, bm, in_dim, hidden, out_dim, x.dtype)
    return call(x, w1t, b1r, w2t, b2r, w3t, b3r)


# ----------------------------------------------------------------------------
# Demo / correctness check
# ----------------------------------------------------------------------------
def init_linear_params(key, in_dim, out_dim, dtype=jnp.float32):
    # Deterministic init mirroring PyTorch's default U(-1/sqrt(in), 1/sqrt(in)).
    kw, kb = jax.random.split(key)
    bound = 1.0 / (in_dim ** 0.5)
    w = jax.random.uniform(kw, (out_dim, in_dim), dtype, -bound, bound)
    b = jax.random.uniform(kb, (out_dim,), dtype, -bound, bound)
    return w, b


if __name__ == "__main__":
    # Small shapes consistent with the module: in_dim=32, hidden=256, out_dim=32.
    # (At this size the Pallas path is pure launch overhead vs. plain XLA; it is
    # kept here only as a correctness demo — the kernel is meant for large B.)
    B, in_dim, hidden, out_dim = 8, 32, 256, 32

    key = jax.random.PRNGKey(0)
    kx, k1, k2, k3 = jax.random.split(key, 4)

    x = jax.random.normal(kx, (B, in_dim), jnp.float32)
    w1, b1 = init_linear_params(k1, in_dim, hidden)
    w2, b2 = init_linear_params(k2, hidden, hidden)
    w3, b3 = init_linear_params(k3, hidden, out_dim)

    params = jax.block_until_ready(prepare_mlp_params(w1, b1, w2, b2, w3, b3))

    out = mlp_forward(x, params)
    out = jax.block_until_ready(out)

    # Reference in plain JAX (same semantics as torch.nn.functional.linear),
    # f32 end to end.  Kernel uses bf16 inputs with f32 accumulation, so the
    # tolerance is loosened accordingly.
    ref = jnp.maximum(x @ w1.T + b1, 0.0)
    ref = jnp.maximum(ref @ w2.T + b2, 0.0)
    ref = ref @ w3.T + b3
    assert out.shape == (B, out_dim)
    assert jnp.allclose(out, ref, atol=2e-2, rtol=2e-2), (
        float(jnp.max(jnp.abs(out - ref))))

    print("KERNEL_OK")
</pallas_src>

<mosaic_0001>
module attributes {stable_mosaic.version = 11 : i64} {
  func.func @mlp_kernel(%arg0: i32, %arg1: memref<8x32xf32, #tpu.memory_space<vmem>>, %arg2: memref<32x256xbf16, #tpu.memory_space<vmem>>, %arg3: memref<1x256xf32, #tpu.memory_space<vmem>>, %arg4: memref<256x256xbf16, #tpu.memory_space<vmem>>, %arg5: memref<1x256xf32, #tpu.memory_space<vmem>>, %arg6: memref<256x32xbf16, #tpu.memory_space<vmem>>, %arg7: memref<1x32xf32, #tpu.memory_space<vmem>>, %arg8: memref<8x32xf32, #tpu.memory_space<vmem>>) attributes {dimension_semantics = [#tpu.dimension_semantics<parallel>], iteration_bounds = array<i64: 1>, scalar_prefetch = 0 : i64, scratch_operands = 0 : i64, tpu.core_type = #tpu.core_type<tc>, window_params = [{transform_indices = @transform_0, window_bounds = array<i64: 8, 32>}, {pipeline_mode = #tpu.pipeline_mode<synchronous>, transform_indices = @transform_1, window_bounds = array<i64: 32, 256>}, {pipeline_mode = #tpu.pipeline_mode<synchronous>, transform_indices = @transform_2, window_bounds = array<i64: 1, 256>}, {pipeline_mode = #tpu.pipeline_mode<synchronous>, transform_indices = @transform_3, window_bounds = array<i64: 256, 256>}, {pipeline_mode = #tpu.pipeline_mode<synchronous>, transform_indices = @transform_4, window_bounds = array<i64: 1, 256>}, {pipeline_mode = #tpu.pipeline_mode<synchronous>, transform_indices = @transform_5, window_bounds = array<i64: 256, 32>}, {pipeline_mode = #tpu.pipeline_mode<synchronous>, transform_indices = @transform_6, window_bounds = array<i64: 1, 32>}, {transform_indices = @transform_7, window_bounds = array<i64: 8, 32>}]} {
    %c0 = arith.constant 0 : index
    %c0_0 = arith.constant 0 : index
    %0 = vector.load %arg1[%c0, %c0_0] : memref<8x32xf32, #tpu.memory_space<vmem>>, vector<8x32xf32>
    %1 = arith.truncf %0 : vector<8x32xf32> to vector<8x32xbf16>
    %c0_1 = arith.constant 0 : index
    %c0_2 = arith.constant 0 : index
    %2 = vector.load %arg2[%c0_1, %c0_2] : memref<32x256xbf16, #tpu.memory_space<vmem>>, vector<32x256xbf16>
    %cst = arith.constant dense<0.000000e+00> : vector<8x256xf32>
    %3 = tpu.matmul %1, %2, %cst {dimension_numbers = #tpu.dot_dimension_numbers<[1], [0], [0], [1], [0, 0, 1, 1], [], []>} : vector<8x32xbf16>, vector<32x256xbf16>, vector<8x256xf32> -> vector<8x256xf32>
    %c0_3 = arith.constant 0 : index
    %c0_4 = arith.constant 0 : index
    %4 = vector.load %arg3[%c0_3, %c0_4] : memref<1x256xf32, #tpu.memory_space<vmem>>, vector<1x256xf32>
    %5 = vector.broadcast %4 : vector<1x256xf32> to vector<8x256xf32>
    %6 = arith.addf %3, %5 : vector<8x256xf32>
    %cst_5 = arith.constant 0.000000e+00 : f32
    %7 = vector.broadcast %cst_5 : f32 to vector<8x256xf32>
    %8 = arith.maximumf %6, %7 : vector<8x256xf32>
    %9 = arith.truncf %8 : vector<8x256xf32> to vector<8x256xbf16>
    %c0_6 = arith.constant 0 : index
    %c0_7 = arith.constant 0 : index
    %10 = vector.load %arg4[%c0_6, %c0_7] : memref<256x256xbf16, #tpu.memory_space<vmem>>, vector<256x256xbf16>
    %cst_8 = arith.constant dense<0.000000e+00> : vector<8x256xf32>
    %11 = tpu.matmul %9, %10, %cst_8 {dimension_numbers = #tpu.dot_dimension_numbers<[1], [0], [0], [1], [0, 0, 1, 1], [], []>} : vector<8x256xbf16>, vector<256x256xbf16>, vector<8x256xf32> -> vector<8x256xf32>
    %c0_9 = arith.constant 0 : index
    %c0_10 = arith.constant 0 : index
    %12 = vector.load %arg5[%c0_9, %c0_10] : memref<1x256xf32, #tpu.memory_space<vmem>>, vector<1x256xf32>
    %13 = vector.broadcast %12 : vector<1x256xf32> to vector<8x256xf32>
    %14 = arith.addf %11, %13 : vector<8x256xf32>
    %cst_11 = arith.constant 0.000000e+00 : f32
    %15 = vector.broadcast %cst_11 : f32 to vector<8x256xf32>
    %16 = arith.maximumf %14, %15 : vector<8x256xf32>
    %17 = arith.truncf %16 : vector<8x256xf32> to vector<8x256xbf16>
    %c0_12 = arith.constant 0 : index
    %c0_13 = arith.constant 0 : index
    %18 = vector.load %arg6[%c0_12, %c0_13] : memref<256x32xbf16, #tpu.memory_space<vmem>>, vector<256x32xbf16>
    %cst_14 = arith.constant dense<0.000000e+00> : vector<8x32xf32>
    %19 = tpu.matmul %17, %18, %cst_14 {dimension_numbers = #tpu.dot_dimension_numbers<[1], [0], [0], [1], [0, 0, 1, 1], [], []>} : vector<8x256xbf16>, vector<256x32xbf16>, vector<8x32xf32> -> vector<8x32xf32>
    %c0_15 = arith.constant 0 : index
    %c0_16 = arith.constant 0 : index
    %20 = vector.load %arg7[%c0_15, %c0_16] : memref<1x32xf32, #tpu.memory_space<vmem>>, vector<1x32xf32>
    %21 = vector.broadcast %20 : vector<1x32xf32> to vector<8x32xf32>
    %22 = arith.addf %19, %21 : vector<8x32xf32>
    %c0_17 = arith.constant 0 : index
    %c0_18 = arith.constant 0 : index
    %23 = vector.load %arg8[%c0_17, %c0_18] : memref<8x32xf32, #tpu.memory_space<vmem>>, vector<8x32xf32>
    tpu.vector_store %arg8[%c0_17, %c0_18], %22 {strides = array<i32>} : memref<8x32xf32, #tpu.memory_space<vmem>>, vector<8x32xf32>,
    return
  }
  func.func @transform_0(%arg0: i32) -> (i32, i32) {
    %c0_i32 = arith.constant 0 : i32
    %c0_i32_0 = arith.constant 0 : i32
    return %arg0, %c0_i32 : i32, i32
  }
  func.func @transform_1(%arg0: i32) -> (i32, i32) {
    %c0_i32 = arith.constant 0 : i32
    %c0_i32_0 = arith.constant 0 : i32
    %c0_i32_1 = arith.constant 0 : i32
    return %c0_i32, %c0_i32_0 : i32, i32
  }
  func.func @transform_2(%arg0: i32) -> (i32, i32) {
    %c0_i32 = arith.constant 0 : i32
    %c0_i32_0 = arith.constant 0 : i32
    %c0_i32_1 = arith.constant 0 : i32
    return %c0_i32, %c0_i32_0 : i32, i32
  }
  func.func @transform_3(%arg0: i32) -> (i32, i32) {
    %c0_i32 = arith.constant 0 : i32
    %c0_i32_0 = arith.constant 0 : i32
    %c0_i32_1 = arith.constant 0 : i32
    return %c0_i32, %c0_i32_0 : i32, i32
  }
  func.func @transform_4(%arg0: i32) -> (i32, i32) {
    %c0_i32 = arith.constant 0 : i32
    %c0_i32_0 = arith.constant 0 : i32
    %c0_i32_1 = arith.constant 0 : i32
    return %c0_i32, %c0_i32_0 : i32, i32
  }
  func.func @transform_5(%arg0: i32) -> (i32, i32) {
    %c0_i32 = arith.constant 0 : i32
    %c0_i32_0 = arith.constant 0 : i32
    %c0_i32_1 = arith.constant 0 : i32
    return %c0_i32, %c0_i32_0 : i32, i32
  }
  func.func @transform_6(%arg0: i32) -> (i32, i32) {
    %c0_i32 = arith.constant 0 : i32
    %c0_i32_0 = arith.constant 0 : i32
    %c0_i32_1 = arith.constant 0 : i32
    return %c0_i32, %c0_i32_0 : i32, i32
  }
  func.func @transform_7(%arg0: i32) -> (i32, i32) {
    %c0_i32 = arith.constant 0 : i32
    %c0_i32_0 = arith.constant 0 : i32
    return %arg0, %c0_i32 : i32, i32
  }
}

</mosaic_0001>

<bundles_post_ra>
// kernel: tpu_custom_call.1
= control target key start
LH: loop header
LB: loop body
LE: loop exit
PB: predicated region body
PF: predicated region fallthrough
CT: control target
= control target key end

     0   :  { %12 = vsyncpa [#allocation3], 0  ;;  %s996_s0 = inlined_call_operand.vmem [shape: f32[8,32], index: 0, kind: input, shape index: {}]   ;;  %s997_s1 = inlined_call_operand.vmem [shape: bf16[32,256], index: 1, kind: input, shape index: {}]   ;;  %s998_s2 = inlined_call_operand.vmem [shape: f32[1,256], index: 2, kind: input, shape index: {}]   ;;  %s999_s3 = inlined_call_operand.hbm [shape: bf16[256,256], index: 3, kind: input, shape index: {}]   ;;  %s1000_s4 = inlined_call_operand.vmem [shape: f32[1,256], index: 4, kind: input, shape index: {}]   ;;  %s1001_s5 = inlined_call_operand.vmem [shape: bf16[256,32], index: 5, kind: input, shape index: {}]   ;;  %s1002_s6 = inlined_call_operand.vmem [shape: f32[1,32], index: 6, kind: input, shape index: {}]   ;;  %s1003_s7 = inlined_call_operand.hbm [shape: f32[8,32], index: 7, kind: output, shape index: {}]  }
   0x1   :  { %13 = vsyncpa [#allocation4], 0  ;;  %s24_s26 = sshll.u32 %s999_s3, 4  ;;  %s859_s27 = smov [#allocation2]   ;;  %s25_s26 = int_to_ptr.hbm [resolvable:$true] %s24_s26 }
   0x2   :  { %s26_s28 = sshll.u32 %s859_s27, 4  ;;  %s860_s29 = smov 128   ;;  %s27_s28 = int_to_ptr.vmem [resolvable:$true] %s26_s28 }
   0x3   :  { %s861_s30 = smov 8  }
   0x4   :  { %32 = dma.hbm_to_vmem [thread:$0]  %s25_s26, 4096, %s27_s28, [#allocation3], %s860_s29, %s860_s29, %s861_s30  }
   0x5   :  { %855 = dma.done.wait [#allocation3], 4096  }
   0x6   :  { %856 = vsyncadd [#allocation3], 4294963200  ;;  %v550_v0 = vld [vmem:[%s997_s1 + $0x10] sm:$0xf]  ;;  %v753_v1 = vld [vmem:[%s997_s1 + $0x14] sm:$0xf0] }
   0x7   :  { %v752_v2 = vld [vmem:[%s997_s1 + $0x14] sm:$0xf]  ;;  %v551_v3 = vor.u32 %v753_v1, %v550_v0  ;;  %v552_v4 = vld [vmem:[%s997_s1 + $0x18] sm:$0xf0]  ;;  %v542_v5 = vld [vmem:[%s997_s1] sm:$0xf] }
   0x8   :  { %v751_v6 = vld [vmem:[%s997_s1 + $0x4] sm:$0xf0]  ;;  %v555_v7 = vor.u32 %v752_v2, %v552_v4  ;;  %v750_v8 = vld [vmem:[%s997_s1 + $0x4] sm:$0xf]  ;;  %v544_v9 = vld [vmem:[%s997_s1 + $0x8] sm:$0xf0] }
   0x9   :  { %v44_v10 = vld [vmem:[%s996_s0] sm:$0xff]  ;;  %vm76_vm0 = vcmask 261120   ;;  %86 = vmatpush.bf16.msra.mxu0 %v551_v3  ;;  %v543_v11 = vor.u32 %v751_v6, %v542_v5  ;;  %v616_v12 = vld [vmem:[#allocation2 + $0x70] sm:$0xf]  ;;  %v769_v13 = vld [vmem:[#allocation2 + $0x74] sm:$0xf0]  ;;  %v547_v15 = vor.u32 %v750_v8, %v544_v9 }
   0xa   :  { %v680_v14 = vld [vmem:[#allocation2 + $0xf0] sm:$0xf]  ;;  %99 = vmatpush.bf16.msra.mxu1 %v555_v7  ;;  %v617_v16 = vor.u32 %v769_v13, %v616_v12  ;;  %v785_v17 = vld [vmem:[#allocation2 + $0xf4] sm:$0xf0]  ;;  %v768_v18 = vld [vmem:[#allocation2 + $0x74] sm:$0xf]  ;;  %v45_v25 = vpack.c.bf16 %v44_v10, %v44_v10 }
   0xb   :  { %v618_v19 = vld [vmem:[#allocation2 + $0x78] sm:$0xf0]  ;;  %v681_v20 = vor.u32 %v785_v17, %v680_v14  ;;  %v784_v22 = vld [vmem:[#allocation2 + $0xf4] sm:$0xf]  ;;  %v608_v24 = vld [vmem:[#allocation2 + $0x60] sm:$0xf] }
   0xc   :  { %v621_v21 = vor.u32 %v768_v18, %v618_v19  ;;  %v682_v23 = vld [vmem:[#allocation2 + $0xf8] sm:$0xf0]  ;;  %308 = vmatpush.bf16.msra.mxu2 %v617_v16  ;;  %v767_v27 = vld [vmem:[#allocation2 + $0x64] sm:$0xf0]  ;;  %v672_v28 = vld [vmem:[#allocation2 + $0xe0] sm:$0xf] }
   0xd   :  { %v685_v26 = vor.u32 %v784_v22, %v682_v23  ;;  %v783_v29 = vld [vmem:[#allocation2 + $0xe4] sm:$0xf0]  ;;  %87 = vmatpush.bf16.msra.mxu0 %v543_v11  ;;  %321 = vmatpush.bf16.msra.mxu3 %v681_v20  ;;  %v609_v30 = vor.u32 %v767_v27, %v608_v24  ;;  %v766_v32 = vld [vmem:[#allocation2 + $0x64] sm:$0xf]  ;;  %v610_v33 = vld [vmem:[#allocation2 + $0x68] sm:$0xf0] }
   0xe   :  { %v673_v31 = vor.u32 %v783_v29, %v672_v28  ;;  %v782_v34 = vld [vmem:[#allocation2 + $0xe4] sm:$0xf]  ;;  %100 = vmatpush.bf16.msra.mxu1 %v547_v15  ;;  %v613_v35 = vor.u32 %v766_v32, %v610_v33  ;;  %v674_v36 = vld [vmem:[#allocation2 + $0xe8] sm:$0xf0]  ;;  %v600_v37 = vld [vmem:[#allocation2 + $0x50] sm:$0xf] }
   0xf   :  { %v765_v38 = vld [vmem:[#allocation2 + $0x54] sm:$0xf0]  ;;  %v677_v39 = vor.u32 %v782_v34, %v674_v36  ;;  %v664_v40 = vld [vmem:[#allocation2 + $0xd0] sm:$0xf]  ;;  %v764_v42 = vld [vmem:[#allocation2 + $0x54] sm:$0xf] }
  0x10   :  { %v781_v41 = vld [vmem:[#allocation2 + $0xd4] sm:$0xf0]  ;;  %556 = vmatmul.msk.bf16.vlgmr.msra.gmra.mxu0 %vm76_vm0, %v45_v25  ;;  %309 = vmatpush.bf16.msra.mxu2 %v609_v30  ;;  %v601_v43 = vor.u32 %v765_v38, %v600_v37  ;;  %v602_v44 = vld [vmem:[#allocation2 + $0x58] sm:$0xf0]  ;;  %v780_v45 = vld [vmem:[#allocation2 + $0xd4] sm:$0xf] }
  0x11   :  { %334 = vmatpush.bf16.msrb.mxu0 %v621_v21  ;;  %v666_v46 = vld [vmem:[#allocation2 + $0xd8] sm:$0xf0]  ;;  %557 = vmatmul.msk.bf16.vlgmr.msra.gmra.mxu1 %vm76_vm0, %v45_v25  ;;  %v665_v47 = vor.u32 %v781_v41, %v664_v40  ;;  %v592_v48 = vld [vmem:[#allocation2 + $0x40] sm:$0xf]  ;;  %v763_v49 = vld [vmem:[#allocation2 + $0x44] sm:$0xf0]  ;;  %v605_v50 = vor.u32 %v764_v42, %v602_v44 }
  0x12   :  { %347 = vmatpush.bf16.msrb.mxu1 %v685_v26  ;;  %322 = vmatpush.bf16.msra.mxu3 %v673_v31  ;;  %v656_v51 = vld [vmem:[#allocation2 + $0xc0] sm:$0xf]  ;;  %v779_v52 = vld [vmem:[#allocation2 + $0xc4] sm:$0xf0]  ;;  %v669_v53 = vor.u32 %v780_v45, %v666_v46  ;;  %v762_v54 = vld [vmem:[#allocation2 + $0x44] sm:$0xf]  ;;  %v593_v56 = vor.u32 %v763_v49, %v592_v48 }
  0x13   :  { %v594_v55 = vld [vmem:[#allocation2 + $0x48] sm:$0xf0]  ;;  %v778_v57 = vld [vmem:[#allocation2 + $0xc4] sm:$0xf]  ;;  %v657_v59 = vor.u32 %v779_v52, %v656_v51  ;;  %v584_v60 = vld [vmem:[#allocation2 + $0x30] sm:$0xf] }
  0x14   :  { %310 = vmatpush.bf16.msra.mxu2 %v601_v43  ;;  %v658_v58 = vld [vmem:[#allocation2 + $0xc8] sm:$0xf0]  ;;  %v761_v61 = vld [vmem:[#allocation2 + $0x34] sm:$0xf0]  ;;  %v597_v62 = vor.u32 %v762_v54, %v594_v55  ;;  %v648_v63 = vld [vmem:[#allocation2 + $0xb0] sm:$0xf] }
  0x15   :  { %335 = vmatpush.bf16.msrb.mxu0 %v613_v35  ;;  %v777_v0 = vld [vmem:[#allocation2 + $0xb4] sm:$0xf0]  ;;  %v661_v1 = vor.u32 %v778_v57, %v658_v58  ;;  %v760_v2 = vld [vmem:[#allocation2 + $0x34] sm:$0xf]  ;;  %v586_v3 = vld [vmem:[#allocation2 + $0x38] sm:$0xf0]  ;;  %v585_v4 = vor.u32 %v761_v61, %v584_v60 }
  0x16   :  { %348 = vmatpush.bf16.msrb.mxu1 %v677_v39  ;;  %323 = vmatpush.bf16.msra.mxu3 %v665_v47  ;;  %v776_v5 = vld [vmem:[#allocation2 + $0xb4] sm:$0xf]  ;;  %v650_v6 = vld [vmem:[#allocation2 + $0xb8] sm:$0xf0]  ;;  %v649_v7 = vor.u32 %v777_v0, %v648_v63  ;;  %v576_v8 = vld [vmem:[#allocation2 + $0x20] sm:$0xf]  ;;  %v589_v10 = vor.u32 %v760_v2, %v586_v3 }
  0x17   :  { %v759_v9 = vld [vmem:[#allocation2 + $0x24] sm:$0xf0]  ;;  %v640_v11 = vld [vmem:[#allocation2 + $0xa0] sm:$0xf]  ;;  %v653_v13 = vor.u32 %v776_v5, %v650_v6  ;;  %v758_v14 = vld [vmem:[#allocation2 + $0x24] sm:$0xf] }
  0x18   :  { %311 = vmatpush.bf16.msra.mxu2 %v593_v56  ;;  %v775_v12 = vld [vmem:[#allocation2 + $0xa4] sm:$0xf0]  ;;  %v578_v15 = vld [vmem:[#allocation2 + $0x28] sm:$0xf0]  ;;  %v577_v16 = vor.u32 %v759_v9, %v576_v8  ;;  %v774_v17 = vld [vmem:[#allocation2 + $0xa4] sm:$0xf] }
  0x19   :  { %336 = vmatpush.bf16.msrb.mxu0 %v605_v50  ;;  %v642_v18 = vld [vmem:[#allocation2 + $0xa8] sm:$0xf0]  ;;  %v641_v19 = vor.u32 %v775_v12, %v640_v11  ;;  %v581_v20 = vor.u32 %v758_v14, %v578_v15  ;;  %v568_v22 = vld [vmem:[#allocation2 + $0x10] sm:$0xf]  ;;  %v757_v23 = vld [vmem:[#allocation2 + $0x14] sm:$0xf0] }
  0x1a   :  { %349 = vmatpush.bf16.msrb.mxu1 %v669_v53  ;;  %324 = vmatpush.bf16.msra.mxu3 %v657_v59  ;;  %v645_v21 = vor.u32 %v774_v17, %v642_v18  ;;  %v632_v24 = vld [vmem:[#allocation2 + $0x90] sm:$0xf]  ;;  %v569_v25 = vor.u32 %v757_v23, %v568_v22  ;;  %v773_v26 = vld [vmem:[#allocation2 + $0x94] sm:$0xf0]  ;;  %v756_v27 = vld [vmem:[#allocation2 + $0x14] sm:$0xf] }
  0x1b   :  { %v570_v28 = vld [vmem:[#allocation2 + $0x18] sm:$0xf0]  ;;  %v633_v29 = vor.u32 %v773_v26, %v632_v24  ;;  %v772_v31 = vld [vmem:[#allocation2 + $0x94] sm:$0xf]  ;;  %v560_v34 = vld [vmem:[#allocation2] sm:$0xf] }
  0x1c   :  { %312 = vmatpush.bf16.msra.mxu2 %v585_v4  ;;  %v573_v30 = vor.u32 %v756_v27, %v570_v28  ;;  %v634_v32 = vld [vmem:[#allocation2 + $0x98] sm:$0xf0]  ;;  %v755_v35 = vld [vmem:[#allocation2 + $0x4] sm:$0xf0]  ;;  %v624_v36 = vld [vmem:[#allocation2 + $0x80] sm:$0xf] }
  0x1d   :  { %337 = vmatpush.bf16.msrb.mxu0 %v597_v62  ;;  %v637_v33 = vor.u32 %v772_v31, %v634_v32  ;;  %v561_v37 = vor.u32 %v755_v35, %v560_v34  ;;  %v771_v38 = vld [vmem:[#allocation2 + $0x84] sm:$0xf0]  ;;  %v754_v39 = vld [vmem:[#allocation2 + $0x4] sm:$0xf]  ;;  %v562_v40 = vld [vmem:[#allocation2 + $0x8] sm:$0xf0] }
  0x1e   :  { %350 = vmatpush.bf16.msrb.mxu1 %v661_v1  ;;  %325 = vmatpush.bf16.msra.mxu3 %v649_v7  ;;  %v625_v41 = vor.u32 %v771_v38, %v624_v36  ;;  %v565_v42 = vor.u32 %v754_v39, %v562_v40  ;;  %v770_v43 = vld [vmem:[#allocation2 + $0x84] sm:$0xf]  ;;  %v626_v44 = vld [vmem:[#allocation2 + $0x88] sm:$0xf0]  ;;  %v801_v46 = vld [vmem:[%s1001_s5 + $0x78] sm:$0xff]  ;;  %s862_s9 = smov [#allocation5]  }
  0x1f   :  { %v629_v45 = vor.u32 %v770_v43, %v626_v44  ;;  %v793_v47 = vld [vmem:[%s1001_s5 + $0x38] sm:$0xff]  ;;  %v800_v48 = vld [vmem:[%s1001_s5 + $0x70] sm:$0xff]  ;;  %v799_v50 = vld [vmem:[%s1001_s5 + $0x68] sm:$0xff]  ;;  %s528_s10 = sshll.u32 %s862_s9, 4  ;;  %s530_s13 = sshll.u32 %s1003_s7, 4  ;;  %s529_s10 = int_to_ptr.vmem [resolvable:$true] %s528_s10  ;;  %s531_s13 = int_to_ptr.hbm [resolvable:$true] %s530_s13 }
  0x20   :  { %313 = vmatpush.bf16.msra.mxu2 %v577_v16  ;;  %v792_v49 = vld [vmem:[%s1001_s5 + $0x30] sm:$0xff]  ;;  %v791_v51 = vld [vmem:[%s1001_s5 + $0x28] sm:$0xff]  ;;  %v798_v52 = vld [vmem:[%s1001_s5 + $0x60] sm:$0xff] }
  0x21   :  { %338 = vmatpush.bf16.msrb.mxu0 %v589_v10  ;;  %v790_v53 = vld [vmem:[%s1001_s5 + $0x20] sm:$0xff]  ;;  %v797_v54 = vld [vmem:[%s1001_s5 + $0x58] sm:$0xff]  ;;  %v796_v56 = vld [vmem:[%s1001_s5 + $0x50] sm:$0xff] }
  0x22   :  { %351 = vmatpush.bf16.msrb.mxu1 %v653_v13  ;;  %326 = vmatpush.bf16.msra.mxu3 %v641_v19  ;;  %v50_v55 = vld [vmem:[%s998_s2] sm:$0x3]  ;;  %v789_v5 = vld [vmem:[%s1001_s5 + $0x18] sm:$0xff]  ;;  %v795_v6 = vld [vmem:[%s1001_s5 + $0x48] sm:$0xff] }
  0x23   :  { %v52_v57 = vperm.slane %v50_v55, 0  ;;  %v53_v58 = vperm.slane %v50_v55, 1  ;;  %v788_v7 = vld [vmem:[%s1001_s5 + $0x10] sm:$0xff]  ;;  %v794_v8 = vld [vmem:[%s1001_s5 + $0x40] sm:$0xff]  ;;  %v787_v9 = vld [vmem:[%s1001_s5 + $0x8] sm:$0xff] }
  0x24   :  { %314 = vmatpush.bf16.msra.mxu2 %v569_v25  ;;  %v786_v10 = vld [vmem:[%s1001_s5] sm:$0xff] }
  0x25   :  { %339 = vmatpush.bf16.msrb.mxu0 %v581_v20  ;;  %v142_v11 = vld [vmem:[%s1000_s4] sm:$0x3] }
  0x26   :  { %352 = vmatpush.bf16.msrb.mxu1 %v645_v21  ;;  %327 = vmatpush.bf16.msra.mxu3 %v633_v29  ;;  %v145_v12 = vperm.slane %v142_v11, 1  ;;  %v144_v17 = vperm.slane %v142_v11, 0  ;;  %v806_v31 = vld [vmem:[%s1002_s6] ss:$0 sm:$0xff] }
  0x28   :  { %315 = vmatpush.bf16.msra.mxu2 %v561_v37 }
  0x29   :  { %340 = vmatpush.bf16.msrb.mxu0 %v573_v30 }
  0x2a   :  { %353 = vmatpush.bf16.msrb.mxu1 %v637_v33  ;;  %328 = vmatpush.bf16.msra.mxu3 %v625_v41 }
  0x2c   :  { %496 = vmatpush.bf16.msrb.mxu2 %v793_v47 }
  0x2d   :  { %341 = vmatpush.bf16.msrb.mxu0 %v565_v42 }
  0x2e   :  { %354 = vmatpush.bf16.msrb.mxu1 %v629_v45  ;;  %509 = vmatpush.bf16.msrb.mxu3 %v801_v46 }
  0x30   :  { %497 = vmatpush.bf16.msrb.mxu2 %v792_v49 }
  0x32   :  { %510 = vmatpush.bf16.msrb.mxu3 %v800_v48 }
  0x34   :  { %498 = vmatpush.bf16.msrb.mxu2 %v791_v51 }
  0x36   :  { %511 = vmatpush.bf16.msrb.mxu3 %v799_v50 }
  0x38   :  { %499 = vmatpush.bf16.msrb.mxu2 %v790_v53 }
  0x3a   :  { %512 = vmatpush.bf16.msrb.mxu3 %v798_v52 }
  0x3c   :  { %500 = vmatpush.bf16.msrb.mxu2 %v789_v5 }
  0x3e   :  { %513 = vmatpush.bf16.msrb.mxu3 %v797_v54 }
  0x40   :  { %501 = vmatpush.bf16.msrb.mxu2 %v788_v7 }
  0x42   :  { %514 = vmatpush.bf16.msrb.mxu3 %v796_v56 }
  0x44   :  { %502 = vmatpush.bf16.msrb.mxu2 %v787_v9 }
  0x46   :  { %515 = vmatpush.bf16.msrb.mxu3 %v795_v6 }
  0x48   :  { %503 = vmatpush.bf16.msrb.mxu2 %v786_v10 }
  0x4a   :  { %516 = vmatpush.bf16.msrb.mxu3 %v794_v8 }
  0x8d   :  { %v89_v59 = vpop.f32.mrf.mxu0 }
  0x8e   :  { %v90_v60 = vadd.f32 %v89_v59, %v52_v57  ;;  %v102_v61 = vpop.f32.mrf.mxu1 }
  0x8f   :  { %v103_v62 = vadd.f32 %v102_v61, %v53_v58 }
  0x90   :  { %v106_v63 = vmax.f32 %v90_v60, 0.0 }
  0x91   :  { %v107_v0 = vmax.f32 %v103_v62, 0.0 }
  0x92   :  { %v108_v1 = vpack.c.bf16 %v106_v63, %v106_v63 }
  0x93   :  { %v109_v2 = vpack.c.bf16 %v107_v0, %v107_v0 }
  0x94   :  { %316 = vmatmul.bf16.vlgmr.msra.gmra.mxu2 %v108_v1  ;;  %342 = vmatmul.bf16.vlgmr.msrb.gmra.mxu0 %v108_v1 }
  0x95   :  { %329 = vmatmul.bf16.vlgmr.msra.gmra.mxu3 %v109_v2  ;;  %355 = vmatmul.bf16.vlgmr.msrb.gmra.mxu1 %v109_v2  ;;  %v91_v3 = vpop.f32.mrf.mxu0 }
  0x96   :  { %v104_v4 = vpop.f32.mrf.mxu1 }
 0x111   :  { %v343_v13 = vpop.f32.mrf.mxu0 }
 0x112   :  { %v344_v14 = vadd.f32 %v343_v13, %v145_v12  ;;  %v356_v15 = vpop.f32.mrf.mxu1 }
 0x114   :  { %v357_v16 = vadd.f32 %v356_v15, %v344_v14 }
 0x116   :  { %v361_v18 = vmax.f32 %v357_v16, 0.0 }
 0x117   :  { %v317_v19 = vpop.f32.mrf.mxu2 }
 0x118   :  { %v363_v20 = vpack.c.bf16 %v361_v18, %v361_v18  ;;  %v318_v21 = vadd.f32 %v317_v19, %v144_v17  ;;  %v330_v22 = vpop.f32.mrf.mxu3 }
 0x119   :  { %v345_v23 = vpop.f32.mrf.mxu0 }
 0x11a   :  { %v331_v24 = vadd.f32 %v330_v22, %v318_v21  ;;  %v358_v25 = vpop.f32.mrf.mxu1  ;;  %517 = vmatmul.bf16.vlgmr.msrb.gmra.mxu3 %v363_v20 }
 0x11c   :  { %v360_v26 = vmax.f32 %v331_v24, 0.0 }
 0x11e   :  { %v362_v27 = vpack.c.bf16 %v360_v26, %v360_v26 }
 0x11f   :  { %v319_v28 = vpop.f32.mrf.mxu2 }
 0x120   :  { %v332_v29 = vpop.f32.mrf.mxu3  ;;  %504 = vmatmul.bf16.vlgmr.msrb.gmra.mxu2 %v362_v27 }
 0x19d   :  { %v518_v30 = vpop.f32.mrf.mxu3 }
 0x1a3   :  { %v505_v32 = vpop.f32.mrf.mxu2 }
 0x1a4   :  { %v506_v33 = vadd.f32 %v806_v31, %v505_v32 }
 0x1a5   :  { %v520_v34 = vpop.f32.mrf.mxu3 }
 0x1a6   :  { %v519_v35 = vadd.f32 %v518_v30, %v506_v33 }
 0x1a8   :  { %522 = vst.msk [vmem:[#allocation5] sm:$0xff] %vm76_vm0, %v519_v35 }
 0x1a9   :  { %533 = dma.vmem_to_hbm [thread:$0]  %s529_s10, 128, %s531_s13, [#allocation4]  }
 0x1ab   :  { %v507_v36 = vpop.f32.mrf.mxu2 }
 0x1ac   :  { %857 = dma.done.wait [#allocation4], 128  }
 0x1ad   :  { %858 = vsyncadd [#allocation4], 4294967168 }
 0x1ae   :  { %538 = vsyncpa [#allocation3], 1 }
 0x1af   :  { %539 = vsyncpa [#allocation4], 1 }

</bundles_post_ra>
